<compile_context>
chip_gen: v7x
topology: tpu7x:2x2x1
jax: 0.10.0
libtpu: 0.0.40
codegen_flags: <defaults>
</compile_context>

<pallas_src>
import jax
import jax.numpy as jnp
from jax.experimental import pallas as pl
from jax.experimental.pallas import tpu as pltpu


def _round_up(x, m):
    return (x + m - 1) // m * m


def quiznet_kernel(x_ref, w1_ref, b1_ref, w2_ref, b2_ref, w3_ref, b3_ref, o_ref):
    """One batch tile; batch is the lane (last) axis.

    x_ref : (21, tB)  input tile (compute dtype)
    w1_ref: (50, 21)  fc1 weight, native PyTorch (out, in) order (compute dtype)
    b1_ref: (50, 1)   fc1 bias column (f32)
    w2_ref: (10, 50)  fc2 weight (compute dtype)
    b2_ref: (10, 1)   fc2 bias column (f32)
    w3_ref: (10, 1)   fc3 weight as a column (f32) -> VPU/XLU path
    b3_ref: (1, 1)    fc3 bias (f32)
    o_ref : (1, tB)   sigmoid output tile (f32), lane-dense
    """
    x = x_ref[...]

    # fc1 + ReLU: (50, 21) @ (21, tB) -> (50, tB), f32 accumulation on the MXU.
    h1 = jnp.dot(w1_ref[...], x, preferred_element_type=jnp.float32) + b1_ref[...]
    h1 = jnp.maximum(h1, 0.0)

    # fc2 + ReLU: (10, 50) @ (50, tB) -> (10, tB).
    h2 = jnp.dot(w2_ref[...], h1.astype(w2_ref.dtype),
                 preferred_element_type=jnp.float32) + b2_ref[...]
    h2 = jnp.maximum(h2, 0.0)

    # fc3 + Sigmoid: K=10, N=1 is almost all MXU padding -> VPU multiply + sublane reduce.
    h3 = jnp.sum(w3_ref[...] * h2, axis=0, keepdims=True) + b3_ref[...]   # (1, tB)
    o_ref[...] = jax.nn.sigmoid(h3).astype(o_ref.dtype)


def quiznet_forward(x, params, *, block_batch=8192, compute_dtype=jnp.float32):
    """QuizNet forward. x: (B, 21) f32 (PyTorch layout). Returns (B, 1) f32."""
    w1, b1, w2, b2, w3t, b3 = params
    B = x.shape[0]

    # Batch tile: multiple of 128 lanes, capped by block_batch and by the (padded)
    # batch size. Even an 8192-wide tile, double-buffered, stays well inside the
    # default scoped-VMEM limit on v5e/v6e/v7x.
    tb = min(_round_up(block_batch, 128), _round_up(B, 128))
    Bp = _round_up(B, tb)

    xt = x.T.astype(compute_dtype)                      # (21, B) batch-minor
    if Bp != B:
        xt = jnp.pad(xt, ((0, 0), (0, Bp - B)))

    w1c = w1.astype(compute_dtype)
    w2c = w2.astype(compute_dtype)

    grid = (Bp // tb,)
    const = lambda a: pl.BlockSpec(a.shape, lambda i: (0, 0))   # resident in VMEM

    cdt_size = jnp.dtype(compute_dtype).itemsize
    flops = 2 * B * (21 * 50 + 50 * 10 + 10 * 1)
    bytes_accessed = (21 * Bp * cdt_size                        # x
                      + (50 * 21 + 10 * 50) * cdt_size          # W1, W2
                      + (50 + 10 + 10 + 1) * 4                  # biases + fc3 column
                      + Bp * 4)                                 # output

    out_t = pl.pallas_call(
        quiznet_kernel,
        out_shape=jax.ShapeDtypeStruct((1, Bp), jnp.float32),
        grid=grid,
        in_specs=[
            pl.BlockSpec((21, tb), lambda i: (0, i)),           # x tile (lane-dense)
            const(w1c), const(b1), const(w2c), const(b2), const(w3t), const(b3),
        ],
        out_specs=pl.BlockSpec((1, tb), lambda i: (0, i)),      # lane-dense output
        compiler_params=pltpu.CompilerParams(
            dimension_semantics=("parallel",)),                 # megacore sharding on v7x
        cost_estimate=pl.CostEstimate(
            flops=flops, transcendentals=B, bytes_accessed=bytes_accessed),
    )(xt, w1c, b1, w2c, b2, w3t, b3)

    return out_t[:, :B].T                                       # back to PyTorch (B, 1)


def init_params(key):
    """PyTorch nn.Linear default init: U[-1/sqrt(fan_in), +1/sqrt(fan_in)].

    Weights kept in native PyTorch (out_features, in_features) order; biases as
    (out_features, 1) columns; fc3 weight pre-transposed to a (10, 1) column for
    the in-kernel VPU reduce.
    """
    shapes = [(50, 21), (10, 50), (1, 10)]
    params = []
    for out_f, in_f in shapes:
        kw, kb, key = jax.random.split(key, 3)
        bound = 1.0 / jnp.sqrt(float(in_f))
        W = jax.random.uniform(kw, (out_f, in_f), jnp.float32, -bound, bound)
        b = jax.random.uniform(kb, (out_f, 1), jnp.float32, -bound, bound)
        params += [W, b]
    w1, b1, w2, b2, w3, b3 = params
    return [w1, b1, w2, b2, w3.T, b3]                           # w3 -> (10, 1)


if __name__ == "__main__":
    key = jax.random.PRNGKey(0)
    k_x, k_p = jax.random.split(key)

    batch = 256
    x = jax.random.normal(k_x, (batch, 21), jnp.float32)
    params = init_params(k_p)
    w1, b1, w2, b2, w3t, b3 = params

    # Pure-JAX reference (PyTorch semantics).
    h = jnp.maximum(x @ w1.T + b1.T, 0.0)
    h = jnp.maximum(h @ w2.T + b2.T, 0.0)
    ref = jax.nn.sigmoid(h @ w3t + b3.T)

    fwd = jax.jit(lambda x, p: quiznet_forward(x, p, block_batch=128))
    out = jax.block_until_ready(fwd(x, params))                 # 2 grid steps at B=256
    assert out.shape == (batch, 1)
    assert jnp.allclose(out, ref, atol=1e-5, rtol=1e-5)

    # Single-tile f32 path with the large default block (exercises tb >= B clamping).
    out_big = jax.block_until_ready(quiznet_forward(x, params))
    assert jnp.allclose(out_big, ref, atol=1e-5, rtol=1e-5)

    # bf16 operand path (v6e/v7x HBM-bandwidth optimization), looser tolerance.
    out_bf16 = jax.block_until_ready(
        quiznet_forward(x, params, block_batch=128, compute_dtype=jnp.bfloat16))
    assert out_bf16.shape == (batch, 1)
    assert jnp.allclose(out_bf16, ref, atol=3e-2, rtol=3e-2)

    print("KERNEL_OK")
</pallas_src>

<mosaic_0001>
module attributes {stable_mosaic.version = 11 : i64} {
  func.func @quiznet_kernel(%arg0: i32, %arg1: memref<21x128xf32, #tpu.memory_space<vmem>>, %arg2: memref<50x21xf32, #tpu.memory_space<vmem>>, %arg3: memref<50x1xf32, #tpu.memory_space<vmem>>, %arg4: memref<10x50xf32, #tpu.memory_space<vmem>>, %arg5: memref<10x1xf32, #tpu.memory_space<vmem>>, %arg6: memref<10x1xf32, #tpu.memory_space<vmem>>, %arg7: memref<1x1xf32, #tpu.memory_space<vmem>>, %arg8: memref<1x128xf32, #tpu.memory_space<vmem>>) attributes {dimension_semantics = [#tpu.dimension_semantics<parallel>], iteration_bounds = array<i64: 2>, scalar_prefetch = 0 : i64, scratch_operands = 0 : i64, tpu.core_type = #tpu.core_type<tc>, window_params = [{transform_indices = @transform_0, window_bounds = array<i64: 21, 128>}, {pipeline_mode = #tpu.pipeline_mode<synchronous>, transform_indices = @transform_1, window_bounds = array<i64: 50, 21>}, {pipeline_mode = #tpu.pipeline_mode<synchronous>, transform_indices = @transform_2, window_bounds = array<i64: 50, 1>}, {pipeline_mode = #tpu.pipeline_mode<synchronous>, transform_indices = @transform_3, window_bounds = array<i64: 10, 50>}, {pipeline_mode = #tpu.pipeline_mode<synchronous>, transform_indices = @transform_4, window_bounds = array<i64: 10, 1>}, {pipeline_mode = #tpu.pipeline_mode<synchronous>, transform_indices = @transform_5, window_bounds = array<i64: 10, 1>}, {pipeline_mode = #tpu.pipeline_mode<synchronous>, transform_indices = @transform_6, window_bounds = array<i64: 1, 1>}, {transform_indices = @transform_7, window_bounds = array<i64: 1, 128>}]} {
    %c0 = arith.constant 0 : index
    %c0_0 = arith.constant 0 : index
    %0 = vector.load %arg1[%c0, %c0_0] : memref<21x128xf32, #tpu.memory_space<vmem>>, vector<21x128xf32>
    %c0_1 = arith.constant 0 : index
    %c0_2 = arith.constant 0 : index
    %1 = vector.load %arg2[%c0_1, %c0_2] : memref<50x21xf32, #tpu.memory_space<vmem>>, vector<50x21xf32>
    %cst = arith.constant dense<0.000000e+00> : vector<50x128xf32>
    %2 = tpu.matmul %1, %0, %cst {dimension_numbers = #tpu.dot_dimension_numbers<[1], [0], [0], [1], [0, 0, 1, 1], [], []>} : vector<50x21xf32>, vector<21x128xf32>, vector<50x128xf32> -> vector<50x128xf32>
    %c0_3 = arith.constant 0 : index
    %c0_4 = arith.constant 0 : index
    %3 = vector.load %arg3[%c0_3, %c0_4] : memref<50x1xf32, #tpu.memory_space<vmem>>, vector<50x1xf32>
    %4 = vector.broadcast %3 : vector<50x1xf32> to vector<50x128xf32>
    %5 = arith.addf %2, %4 : vector<50x128xf32>
    %cst_5 = arith.constant 0.000000e+00 : f32
    %6 = vector.broadcast %cst_5 : f32 to vector<50x128xf32>
    %7 = arith.maximumf %5, %6 : vector<50x128xf32>
    %c0_6 = arith.constant 0 : index
    %c0_7 = arith.constant 0 : index
    %8 = vector.load %arg4[%c0_6, %c0_7] : memref<10x50xf32, #tpu.memory_space<vmem>>, vector<10x50xf32>
    %cst_8 = arith.constant dense<0.000000e+00> : vector<10x128xf32>
    %9 = tpu.matmul %8, %7, %cst_8 {dimension_numbers = #tpu.dot_dimension_numbers<[1], [0], [0], [1], [0, 0, 1, 1], [], []>} : vector<10x50xf32>, vector<50x128xf32>, vector<10x128xf32> -> vector<10x128xf32>
    %c0_9 = arith.constant 0 : index
    %c0_10 = arith.constant 0 : index
    %10 = vector.load %arg5[%c0_9, %c0_10] : memref<10x1xf32, #tpu.memory_space<vmem>>, vector<10x1xf32>
    %11 = vector.broadcast %10 : vector<10x1xf32> to vector<10x128xf32>
    %12 = arith.addf %9, %11 : vector<10x128xf32>
    %cst_11 = arith.constant 0.000000e+00 : f32
    %13 = vector.broadcast %cst_11 : f32 to vector<10x128xf32>
    %14 = arith.maximumf %12, %13 : vector<10x128xf32>
    %c0_12 = arith.constant 0 : index
    %c0_13 = arith.constant 0 : index
    %15 = vector.load %arg6[%c0_12, %c0_13] : memref<10x1xf32, #tpu.memory_space<vmem>>, vector<10x1xf32>
    %16 = vector.broadcast %15 : vector<10x1xf32> to vector<10x128xf32>
    %17 = arith.mulf %16, %14 : vector<10x128xf32>
    %cst_14 = arith.constant dense<0.000000e+00> : vector<128xf32>
    %18 = vector.multi_reduction <add>, %17, %cst_14 [0] : vector<10x128xf32> to vector<128xf32>
    %19 = vector.shape_cast %18 : vector<128xf32> to vector<1x128xf32>
    %c0_15 = arith.constant 0 : index
    %c0_16 = arith.constant 0 : index
    %20 = vector.load %arg7[%c0_15, %c0_16] : memref<1x1xf32, #tpu.memory_space<vmem>>, vector<1x1xf32>
    %21 = vector.broadcast %20 : vector<1x1xf32> to vector<1x128xf32>
    %22 = arith.addf %19, %21 : vector<1x128xf32>
    %23 = arith.negf %22 : vector<1x128xf32>
    %24 = math.exp %23 : vector<1x128xf32>
    %cst_17 = arith.constant 1.000000e+00 : f32
    %25 = vector.broadcast %cst_17 : f32 to vector<1x128xf32>
    %26 = arith.addf %25, %24 : vector<1x128xf32>
    %27 = arith.divf %25, %26 : vector<1x128xf32>
    %c0_18 = arith.constant 0 : index
    %c0_19 = arith.constant 0 : index
    %28 = vector.load %arg8[%c0_18, %c0_19] : memref<1x128xf32, #tpu.memory_space<vmem>>, vector<1x128xf32>
    tpu.vector_store %arg8[%c0_18, %c0_19], %27 {strides = array<i32>} : memref<1x128xf32, #tpu.memory_space<vmem>>, vector<1x128xf32>,
    return
  }
  func.func @transform_0(%arg0: i32) -> (i32, i32) {
    %c0_i32 = arith.constant 0 : i32
    %c0_i32_0 = arith.constant 0 : i32
    return %c0_i32, %arg0 : i32, i32
  }
  func.func @transform_1(%arg0: i32) -> (i32, i32) {
    %c0_i32 = arith.constant 0 : i32
    %c0_i32_0 = arith.constant 0 : i32
    %c0_i32_1 = arith.constant 0 : i32
    return %c0_i32, %c0_i32_0 : i32, i32
  }
  func.func @transform_2(%arg0: i32) -> (i32, i32) {
    %c0_i32 = arith.constant 0 : i32
    %c0_i32_0 = arith.constant 0 : i32
    %c0_i32_1 = arith.constant 0 : i32
    return %c0_i32, %c0_i32_0 : i32, i32
  }
  func.func @transform_3(%arg0: i32) -> (i32, i32) {
    %c0_i32 = arith.constant 0 : i32
    %c0_i32_0 = arith.constant 0 : i32
    %c0_i32_1 = arith.constant 0 : i32
    return %c0_i32, %c0_i32_0 : i32, i32
  }
  func.func @transform_4(%arg0: i32) -> (i32, i32) {
    %c0_i32 = arith.constant 0 : i32
    %c0_i32_0 = arith.constant 0 : i32
    %c0_i32_1 = arith.constant 0 : i32
    return %c0_i32, %c0_i32_0 : i32, i32
  }
  func.func @transform_5(%arg0: i32) -> (i32, i32) {
    %c0_i32 = arith.constant 0 : i32
    %c0_i32_0 = arith.constant 0 : i32
    %c0_i32_1 = arith.constant 0 : i32
    return %c0_i32, %c0_i32_0 : i32, i32
  }
  func.func @transform_6(%arg0: i32) -> (i32, i32) {
    %c0_i32 = arith.constant 0 : i32
    %c0_i32_0 = arith.constant 0 : i32
    %c0_i32_1 = arith.constant 0 : i32
    return %c0_i32, %c0_i32_0 : i32, i32
  }
  func.func @transform_7(%arg0: i32) -> (i32, i32) {
    %c0_i32 = arith.constant 0 : i32
    %c0_i32_0 = arith.constant 0 : i32
    return %c0_i32, %arg0 : i32, i32
  }
}

</mosaic_0001>

<bundles_post_ra>
// kernel: _lambda_.1
= control target key start
LH: loop header
LB: loop body
LE: loop exit
PB: predicated region body
PF: predicated region fallthrough
CT: control target
= control target key end

     0   :  { %s1171_s0 = inlined_call_operand.vmem [shape: f32[21,256], index: 0, kind: input, shape index: {}]   ;;  %s1172_s1 = inlined_call_operand.vmem [shape: f32[50,21], index: 1, kind: input, shape index: {}]   ;;  %s1173_s2 = inlined_call_operand.vmem [shape: f32[50,1], index: 2, kind: input, shape index: {}]   ;;  %s1174_s3 = inlined_call_operand.vmem [shape: f32[10,50], index: 3, kind: input, shape index: {}]   ;;  %s1175_s4 = inlined_call_operand.vmem [shape: f32[10,1], index: 4, kind: input, shape index: {}]   ;;  %s1176_s5 = inlined_call_operand.vmem [shape: f32[10,1], index: 5, kind: input, shape index: {}]   ;;  %s1177_s6 = inlined_call_operand.<no memory space> [shape: f32[1,1], index: 6, kind: input, shape index: {}]   ;;  %s1178_s7 = inlined_call_operand.hbm [shape: f32[1,256], index: 7, kind: output, shape index: {}]  }
   0x1   :  { %v12_v0 = vstv %s1177_s6 }
   0x2   :  { %13 = vst [vmem:[#allocation2] sm:$0x1] %v12_v0 }
   0x3   :  { %14 = vsyncpa [#allocation5], 0 }
   0x4   :  { %16 = vsyncpa [#allocation5 + $0x1], 0  ;;  %s982_s26 = smov 0   ;;  %s984_s27 = smov 0  }
   0x5   :  { %s986_s28 = smov 0   ;;  %s988_s29 = smov 0  }
   0x6 LB: > { %s720_s6 = sadd.s32 4294967295, %s932_s29   ;;  %s721_s30 = sadd.s32 4294967294, %s932_s29   ;;  %s932_s29 = sphi %s988_s29, %s1184_s29   ;;  %s928_s28 = sphi %s986_s28, %s1183_s28   ;;  %s924_s27 = sphi %s984_s27, %s1182_s27   ;;  %s920_s26 = sphi %s982_s26, %s1181_s26  }
   0x7   : > { %s1005_s8 = sadd.s32 1, %s932_s29   ;;  %s29_s9 = sadd.s32 1, %s928_s28 }
   0x8   : > { %s26_s10 = ssub.s32 %s932_s29, %s1005_s8  ;;  %p36_p0 = scmp.ne.s32.totalorder %s928_s28, %s924_s27 }
   0x9   : > { %p27_p1 = scmp.eq.s32.totalorder %s26_s10, 0  ;;  %p37_p2 = scmp.eq.s32.totalorder %s932_s29, 0 }
   0xa   : > { %p192_p3 = scmp.eq.s32.totalorder %s720_s6, 1  ;;  %p197_p4 = scmp.ne.s32.totalorder %s924_s27, %s920_s26 }
   0xb   : > { %s1018_s11 = scalar_select %p27_p1, %s928_s28, %s29_s9  }
   0xc   : > { %p38_p5 = por %p37_p2, %p36_p0  ;;  %p1020_p6 = por %p192_p3, %p36_p0 }
   0xd   : > { %p198_p7 = scmp.eq.s32.totalorder %s721_s30, 1  ;;  %p723_p9 = scmp.ge.s32.totalorder %s932_s29, 2 }
   0xf   : > { %p1024_p8 = por %p198_p7, %p197_p4  ;;  %232 = sbr.rel (%p723_p9) target bundleno = 29 (0x1d), region = 40 }
  0x16   : > { %235 = sbr.rel (!%p38_p5) target bundleno = 29 (0x1d), region = 44  ;;  %s237_s14 = sand.u32 (%p38_p5), 1, %s928_s28  }
  0x17   : > { %s724_s15 = sshll.u32 (%p38_p5), %s932_s29, 3  ;;  %s819_s16 = smul.u32 (%p38_p5), 24, %s237_s14 }
  0x18   : > { %s241_s19 = scalar_lea.vmem (%p38_p5), %s1171_s0, %s724_s15 }
  0x19   : > { %v273_v1 = vld [vmem:[%s241_s19] sm:$0xff] (%p38_p5)  ;;  %v275_v2 = vld [vmem:[%s241_s19 + $0x10] sm:$0xff] (%p38_p5)  ;;  %s239_s20 = scalar_lea.vmem (%p38_p5), [#allocation3], %s819_s16 }
  0x1a   : > { %v277_v3 = vld [vmem:[%s241_s19 + $0x20] sm:$0xff] (%p38_p5)  ;;  %274 = vst [vmem:[%s239_s20] sm:$0xff] (%p38_p5), %v273_v1  ;;  %276 = vst [vmem:[%s239_s20 + $0x8] sm:$0xff] (%p38_p5), %v275_v2 }
  0x1b   : > { %278 = vst [vmem:[%s239_s20 + $0x10] sm:$0xff] (%p38_p5), %v277_v3 }
  0x1d PF: > { %p725_p10 = scmp.ge.s32.totalorder %s932_s29, 1  ;;  %p283_p11 = scmp.lt.s32.totalorder %s932_s29, 3 }
  0x1f   : > { %p284_p12 = pnand %p725_p10, %p283_p11 }
  0x20   : > { %s1039_s21 = sand.u32 (!%p284_p12), 1, %s924_s27   ;;  %v934_v4 = vmov (!%p284_p12), 0.0|0.0   ;;  %vm935_vm0 = vmmov (!%p284_p12), 0   ;;  %v936_v5 = vmov (!%p284_p12), 0.0   ;;  %v937_v6 = vmov (!%p284_p12), 0   ;;  %v330_v7 = vld [vmem:[%s1173_s2] sm:$0xff] (!%p284_p12) }
  0x21   : > { %287 = sbr.rel (%p284_p12) target bundleno = 564 (0x234), region = 82  ;;  %804 = vmatprep.subr.bf16.mxu0 (!%p284_p12), %v934_v4  ;;  %766 = vmatprep.mubr.msk.f32.mxu0 (!%p284_p12), %vm935_vm0, %v936_v5  ;;  %v332_v8 = vld [vmem:[%s1173_s2 + $0x10] sm:$0xff] (!%p284_p12)  ;;  %v331_v12 = vld [vmem:[%s1173_s2 + $0x8] sm:$0xff] (!%p284_p12)  ;;  %v333_v13 = vld [vmem:[%s1173_s2 + $0x18] sm:$0xff] (!%p284_p12)  ;;  %vm394_vm1 = vcmask (!%p284_p12), 1044480   ;;  %vm372_vm2 = vcmask (!%p284_p12), 171008  }
  0x22   : > { %s820_s22 = smul.u32 (!%p284_p12), 24, %s1039_s21  ;;  %864 = vset.pattern.permute.xlu0 (!%p284_p12), %v937_v6  ;;  %865 = vset.pattern.permute.xlu1 (!%p284_p12), %v937_v6  ;;  %v323_v15 = vld [vmem:[%s1172_s1] sm:$0xff] (!%p284_p12)  ;;  %v335_v17 = vld [vmem:[%s1173_s2 + $0x28] sm:$0xff] (!%p284_p12)  ;;  %v336_v19 = vld [vmem:[%s1173_s2 + $0x30] sm:$0x3] (!%p284_p12)  ;;  %vm519_vm3 = vcmask (!%p284_p12), 408576  }
  0x23   : > { %339 = vperm.xlu0 (!%p284_p12), %864, %v330_v7   ;;  %349 = vperm.xlu1 (!%p284_p12), %865, %v332_v8   ;;  %v334_v16 = vld [vmem:[%s1173_s2 + $0x20] sm:$0xff] (!%p284_p12)  ;;  %v324_v18 = vld [vmem:[%s1172_s1 + $0x8] sm:$0xff] (!%p284_p12)  ;;  %v325_v21 = vld [vmem:[%s1172_s1 + $0x10] sm:$0xff] (!%p284_p12)  ;;  %vm526_vm4 = vcmask (!%p284_p12), 1041408   ;;  %s319_s23 = scalar_lea.vmem (!%p284_p12), [#allocation4], %s1039_s21  ;;  %s648_s10 = scalar_lea.sflag (!%p284_p12), [#allocation5], %s1039_s21 }
  0x24   : > { %s292_s9 = scalar_lea.vmem (!%p284_p12), [#allocation3], %s820_s22  ;;  %v508_v20 = vld [vmem:[%s1175_s4 + $0x8] sm:$0x3] (!%p284_p12)  ;;  %v507_v22 = vld [vmem:[%s1175_s4] sm:$0xff] (!%p284_p12)  ;;  %v326_v24 = vld [vmem:[%s1172_s1 + $0x18] sm:$0xff] (!%p284_p12)  ;;  %s738_s22 = sshll.u32 (!%p284_p12), %s720_s6, 4 }
  0x25   : > { %v320_v9 = vld [vmem:[%s292_s9] sm:$0xff] (!%p284_p12)  ;;  %v321_v10 = vld [vmem:[%s292_s9 + $0x8] sm:$0xff] (!%p284_p12)  ;;  %v322_v14 = vld [vmem:[%s292_s9 + $0x10] sm:$0x1f] (!%p284_p12)  ;;  %s660_s24 = sshll.u32 (!%p284_p12), %s319_s23, 4  ;;  %s1127_s9 = scalar_lea.hbm (!%p284_p12), %s1178_s7, %s738_s22  ;;  %s1129_s24 = int_to_ptr.vmem [resolvable:$true] %s660_s24 }
  0x26   : > { %v805_v11 = vpack.c.bf16 (!%p284_p12), %v321_v10, %v320_v9  ;;  %v608_v23 = vld [vmem:[%s1176_s5 + $0x8] sm:$0x3] (!%p284_p12)  ;;  %v607_v25 = vld [vmem:[%s1176_s5] sm:$0xff] (!%p284_p12)  ;;  %v329_v29 = vld [vmem:[%s1172_s1 + $0x30] sm:$0x3] (!%p284_p12)  ;;  %s870_s14 = scalar_lea.vmem (!%p284_p12), %s1129_s24, 16 }
  0x27   : > { %344 = vperm.xlu0 (!%p284_p12), %864, %v331_v12   ;;  %354 = vperm.xlu1 (!%p284_p12), %865, %v333_v13   ;;  %v629_v26 = vld [vmem:[#allocation2] sm:$0x1] (!%p284_p12)  ;;  %v328_v28 = vld [vmem:[%s1172_s1 + $0x28] sm:$0xff] (!%p284_p12)  ;;  %p871_p13 = scmp.ne.s32.totalorder (!%p284_p12), %s1129_s24, %s870_s14  ;;  %s938_s6 = smov (!%p284_p12), [#allocation4]  }
  0x28   : > { %806 = vmatpush3.bf16.msra.mxu0 %v805_v11  ;;  %v327_v27 = vld [vmem:[%s1172_s1 + $0x20] sm:$0xff]  ;;  %s874_s15 = sshll.u32 %s938_s6, 4  ;;  %s875_s15 = int_to_ptr.vmem [resolvable:$false] %s874_s15 }
  0x29   : > { %764 = vmatprep.subr.mxu0 %v936_v5  ;;  %v505_v30 = vld [vmem:[%s1174_s3] sm:$0xff]  ;;  %p872_p0 = pnand %p871_p13, %p1020_p6  ;;  %s876_s16 = scalar_lea.vmem %s875_s15, 32 }
  0x2a   : > { %801 = vmatprep.mubr.msk.f32.mxu1 %vm519_vm3, %v505_v30  ;;  %p877_p2 = scmp.lt.s32.totalorder %s1129_s24, %s875_s15  ;;  %p878_p3 = scmp.lt.s32.totalorder %s876_s16, %s870_s14 }
  0x2b   : > { %359 = vperm.xlu0 %864, %v334_v16   ;;  %364 = vperm.xlu1 %865, %v335_v17   ;;  %p873_p1 = pneg %p872_p0 }
  0x2c   : > { %765 = vmatpush3.msk.msra.mxu0 %vm394_vm1, %v322_v14  ;;  %p879_p4 = por %p878_p3, %p877_p2 }
  0x2d   : > { %767 = vmatmul.mubr.msk.f32.vlgmr.msra.gmra.mrb[0].mxu0 %vm372_vm2, %v323_v15 }
  0x2e   : > { %769 = vmatprep.mubr.msk.f32.mxu0 %vm935_vm0, %v936_v5  ;;  %p880_p5 = pnand %p879_p4, %p873_p1 }
  0x2f   : > { %369 = vperm.xlu0 %864, %v336_v19   ;;  %516 = vperm.xlu1 %865, %v508_v20   ;;  %v635_v19 = vlaneseq }
  0x31   : > { %770 = vmatmul.mubr.msk.f32.gmra.mrb[2].mxu0 %vm372_vm2, %v324_v18 }
  0x32   : > { %772 = vmatprep.mubr.msk.f32.mxu0 %vm935_vm0, %v936_v5 }
  0x33   : > { %511 = vperm.xlu0 %864, %v507_v22   ;;  %616 = vperm.xlu1 %865, %v608_v23   ;;  %v636_v22 = vshrl.u32 %v635_v19, 7 }
  0x35   : > { %773 = vmatmul.mubr.msk.f32.gmra.mrb[4].mxu0 %vm372_vm2, %v325_v21 }
  0x36   : > { %775 = vmatprep.mubr.msk.f32.mxu0 %vm935_vm0, %v936_v5 }
  0x37   : > { %611 = vperm.xlu0 %864, %v607_v25   ;;  %632 = vperm.xlu1 %865, %v629_v26   ;;  %v637_v25 = vsub.s32 0, %v636_v22 }
  0x39   : > { %776 = vmatmul.mubr.msk.f32.gmra.mrb[6].mxu0 %vm372_vm2, %v326_v24 }
  0x3a   : > { %778 = vmatprep.mubr.msk.f32.mxu0 %vm935_vm0, %v936_v5 }
  0x3d   : > { %779 = vmatmul.mubr.msk.f32.gmra.mrb[8].mxu0 %vm372_vm2, %v327_v27 }
  0x3e   : > { %781 = vmatprep.mubr.msk.f32.mxu0 %vm935_vm0, %v936_v5 }
  0x41   : > { %782 = vmatmul.mubr.msk.f32.gmra.mrb[10].mxu0 %vm372_vm2, %v328_v28 }
  0x42   : > { %784 = vmatprep.mubr.msk.f32.mxu0 %vm935_vm0, %v936_v5  ;;  %v506_v5 = vld [vmem:[%s1174_s3 + $0x8] sm:$0x3] }
  0x45   : > { %785 = vmatmul.mubr.msk.f32.gmra.mrb[12].mxu0 %vm372_vm2, %v329_v29 }
  0xa2   : > { %v340_v31 = vpop.permute.xlu0 %339  ;;  %v350_v39 = vpop.permute.xlu1 %349 }
  0xa6   : > { %v345_v35 = vpop.permute.xlu0 %344  ;;  %v355_v46 = vpop.permute.xlu1 %354 }
  0xaa   : > { %v360_v55 = vpop.permute.xlu0 %359  ;;  %v365_v57 = vpop.permute.xlu1 %364 }
  0xae   : > { %v370_v63 = vpop.permute.xlu0 %369  ;;  %v517_v6 = vpop.permute.xlu1 %516 }
  0xb2   : > { %v512_v7 = vpop.permute.xlu0 %511  ;;  %v617_v13 = vpop.permute.xlu1 %616 }
  0xb6   : > { %v612_v15 = vpop.permute.xlu0 %611  ;;  %v633_v27 = vpop.permute.xlu1 %632 }
  0xb7   : > { %v638_v29 = vrot.slane %v633_v27, %v637_v25 }
 0x100   : > { %v464_v32 = vpop.f32.mrb[0].mxu0 }
 0x101   : > { %v768_v33 = vpop.f32.mrb[1].mxu0  ;;  %v465_v34 = vadd.f32 %v464_v32, %v340_v31 }
 0x103   : > { %v498_v40 = vmax.f32 %v465_v34, 0.0 }
 0x104   : > { %v469_v36 = vpop.f32.mrb[2].mxu0 }
 0x105   : > { %v470_v37 = vadd.f32 %v469_v36, %v345_v35  ;;  %v771_v38 = vpop.f32.mrb[3].mxu0 }
 0x107   : > { %v499_v41 = vmax.f32 %v470_v37, 0.0 }
 0x108   : > { %v474_v42 = vpop.f32.mrb[4].mxu0 }
 0x109   : > { %v774_v43 = vpop.f32.mrb[5].mxu0  ;;  %v807_v44 = vpack.c.bf16 %v499_v41, %v498_v40  ;;  %v475_v45 = vadd.f32 %v474_v42, %v350_v39 }
 0x10b   : > { %808 = vmatprep.subr.bf16.mxu1 %v807_v44  ;;  %v500_v50 = vmax.f32 %v475_v45, 0.0 }
 0x10c   : > { %v479_v47 = vpop.f32.mrb[6].mxu0  ;;  %810 = vmatpush3.bf16.msra.mxu1 %v807_v44 }
 0x10d   : > { %v480_v48 = vadd.f32 %v479_v47, %v355_v46  ;;  %v777_v49 = vpop.f32.mrb[7].mxu0 }
 0x10f   : > { %v501_v51 = vmax.f32 %v480_v48, 0.0 }
 0x110   : > { %v484_v52 = vpop.f32.mrb[8].mxu0 }
 0x111   : > { %v811_v53 = vpack.c.bf16 %v501_v51, %v500_v50  ;;  %v780_v54 = vpop.f32.mrb[9].mxu0  ;;  %v485_v56 = vadd.f32 %v484_v52, %v360_v55 }
 0x113   : > { %812 = vmatprep.subr.bf16.mxu1 %v811_v53  ;;  %v502_v61 = vmax.f32 %v485_v56, 0.0 }
 0x114   : > { %v489_v58 = vpop.f32.mrb[10].mxu0  ;;  %814 = vmatpush3.bf16.msra.mxu1 %v811_v53 }
 0x115   : > { %v490_v59 = vadd.f32 %v489_v58, %v365_v57  ;;  %v783_v60 = vpop.f32.mrb[11].mxu0 }
 0x117   : > { %v503_v62 = vmax.f32 %v490_v59, 0.0 }
 0x118   : > { %v494_v0 = vpop.f32.mrb[12].mxu0 }
 0x119   : > { %v815_v1 = vpack.c.bf16 %v503_v62, %v502_v61  ;;  %v495_v2 = vadd.f32 %v494_v0, %v370_v63  ;;  %v786_v3 = vpop.f32.mrb[13].mxu0 }
 0x11b   : > { %v504_v4 = vmax.f32 %v495_v2, 0.0  ;;  %816 = vmatprep.subr.bf16.mxu1 %v815_v1 }
 0x11c   : > { %818 = vmatpush3.bf16.msra.mxu1 %v815_v1 }
 0x11d   : > { %799 = vmatprep.subr.msk.mxu1 %vm526_vm4, %v504_v4 }
 0x120   : > { %800 = vmatpush3.msk.msra.mxu1 %vm526_vm4, %v504_v4 }
 0x121   : > { %802 = vmatmul.mubr.msk.f32.vlgmr.msra.gmra.mrb[0].mxu1 %vm519_vm3, %v506_v5 }
 0x1f4   : > { %v803_v8 = vpop.f32.mrb[0].mxu1 }
 0x1f5   : > { %v602_v9 = vadd.f32 %v803_v8, %v517_v6  ;;  %v596_v10 = vpop.f32.mrb[1].mxu1 }
 0x1f6   : > { %v597_v11 = vadd.f32 %v596_v10, %v512_v7 }
 0x1f7   : > { %v606_v12 = vmax.f32 %v602_v9, 0.0 }
 0x1f8   : > { %v605_v14 = vmax.f32 %v597_v11, 0.0 }
 0x1f9   : > { %v620_v16 = vmul.f32 %v617_v13, %v606_v12 }
 0x1fa   : > { %v619_v17 = vmul.f32 %v612_v15, %v605_v14 }
 0x1fb   : > { %v621_v18 = vsel %vm526_vm4, %v620_v16, 0.0 }
 0x1fc   : > { %v622_v20 = vadd.f32 %v621_v18, %v619_v17 }
 0x1fe   : > { %v623_v21 = vrot.slane %v622_v20, 4 }
 0x200   : > { %v624_v23 = vadd.f32 %v623_v21, %v622_v20 }
 0x202   : > { %v625_v24 = vrot.slane %v624_v23, 2 }
 0x204   : > { %v626_v26 = vadd.f32 %v625_v24, %v624_v23 }
 0x206   : > { %v627_v28 = vrot.slane %v626_v26, 1 }
 0x208   : > { %v628_v30 = vadd.f32 %v627_v28, %v626_v26 }
 0x20a   : > { %v639_v31 = vadd.f32 %v638_v29, %v628_v30 }
 0x20c   : > { %v737_v32 = vmul.f32 -1.442695, %v639_v31 }
 0x20e   : > { %866 = vpow2.f32 %v737_v32 }
 0x218   : > { %v867_v33 = vpop.eup %866 }
 0x219   : > { %v643_v34 = vadd.f32 1.0, %v867_v33 }
 0x21b   : > { %868 = vrcp.f32 %v643_v34 }
 0x225   : > { %v869_v35 = vpop.eup %868 }
 0x226   : > { %646 = vst [vmem:[%s319_s23] sm:$0x1] %v869_v35 }
 0x227   : > { %883 = shalt.err (!%p880_p5)
}
 0x228   : > { %s884_s21 = scalar_lea.hbm %s1127_s9, 16  ;;  %s888_s19 = scalar_lea.hbm %s1178_s7, 32 }
 0x229   : > { %p885_p7 = scmp.ne.s32.totalorder %s1127_s9, %s884_s21  ;;  %p889_p12 = scmp.lt.u32.totalorder %s1127_s9, %s1178_s7 }
 0x22a   : > { %p890_p13 = scmp.lt.u32.totalorder %s888_s19, %s884_s21  ;;  %p892_p1 = scmp.lt.u32.totalorder %s884_s21, %s1127_s9 }
 0x22b   : > { %p886_p10 = pnand %p885_p7, %p1020_p6 }
 0x22c   : > { %p891_p0 = por %p890_p13, %p889_p12 }
 0x22d   : > { %p887_p11 = pneg %p886_p10 }
 0x22e   : > { %p893_p2 = por %p892_p1, %p891_p0 }
 0x230   : > { %p894_p3 = pnand %p893_p2, %p887_p11 }
 0x232   : > { %897 = shalt.err (!%p894_p3)
}
 0x233   : > { %821 = dma.vmem_to_hbm [thread:$0]  (%p1020_p6), %s1129_s24, 16, %s1127_s9, %s648_s10  }
 0x234 PF: > { %s672_s23 = sand.u32 1, %s920_s26   ;;  %p824_p4 = pnand %p723_p9, %p1024_p8 }
 0x235   : > { %s673_s25 = scalar_lea.sflag [#allocation5], %s672_s23 }
 0x236   : > { %915 = dma.done.wait (!%p824_p4), %s673_s25, 16  }
 0x237   : > { %917 = vsyncadd (!%p824_p4), %s673_s25, 4294967280  ;;  %p19_p5 = scmp.ge.s32.totalorder %s1005_s8, 4   ;;  %s1181_s26 = smov %s924_s27 }
 0x238   : > { %s1182_s27 = smov %s928_s28  ;;  %s1183_s28 = smov %s1018_s11 }
 0x239   : > { %s1184_s29 = smov %s1005_s8  ;;  %21 = sbr.rel (!%p19_p5) target bundleno = 6 (0x6), region = 126 }
 0x240   :  { %677 = vsyncpa [#allocation5], 1 }
 0x241   :  { %679 = vsyncpa [#allocation5 + $0x1], 1 }

</bundles_post_ra>
